<compile_context>
chip_gen: v7x
topology: tpu7x:2x2x1
jax: 0.10.0
libtpu: 0.0.40
codegen_flags: <defaults>
</compile_context>

<pallas_src>
import functools

import jax
import jax.numpy as jnp
import numpy as np
from jax.experimental import pallas as pl
from jax.experimental.pallas import tpu as pltpu


# ----------------------------------------------------------------------------
# Small helpers
# ----------------------------------------------------------------------------
def _round_up(x, m):
    return ((x + m - 1) // m) * m


def _row_tiling(m, cap=512):
    """Row tile TM (multiple of 8, <= cap) and padded row count."""
    m8 = _round_up(m, 8)
    if m8 <= cap:
        return m8, m8
    return cap, _round_up(m, cap)


def _proj_row_tiling(m, k, v_pad, budget=24 * 1024 * 1024, cap=512):
    """Row tile for the vocab-head kernel sized from a VMEM budget so it also
    fits v7x (64 MiB physical VMEM, 32 MiB scoped default)."""
    fixed = 2 * k * v_pad * 2 + 2 * v_pad * 4          # dbl-buffered bf16 W + f32 b
    per_row = 2 * k * 4 + 3 * v_pad * 4                # dbl-buf x + dbl-buf out + logits temp
    tm_cap = max(8, min(cap, ((budget - fixed) // per_row) // 8 * 8))
    m8 = _round_up(m, 8)
    if m8 <= tm_cap:
        return m8, m8
    return tm_cap, _round_up(m, tm_cap)


def _pad_rows(x2, m_pad):
    m = x2.shape[0]
    if m_pad != m:
        x2 = jnp.pad(x2, ((0, m_pad - m), (0, 0)))
    return x2


def _chunk_time(s):
    """Timesteps per LSTM grid step (whole sequence if short)."""
    if s <= 32:
        return s, s
    t = 16
    return t, _round_up(s, t)


# ----------------------------------------------------------------------------
# Pallas kernels
# ----------------------------------------------------------------------------
def linear_kernel(x_ref, w_ref, b_ref, o_ref):
    """o = x @ w + b.  x cast to bf16 in-kernel, w is pre-cast bf16, f32 acc."""
    x = x_ref[...].astype(jnp.bfloat16)
    o_ref[...] = (jnp.dot(x, w_ref[...], preferred_element_type=jnp.float32)
                  + b_ref[...])


def dual_linear_kernel(x1_ref, x2_ref, w1_ref, w2_ref, b_ref, o_ref):
    """o = x1 @ w1 + x2 @ w2 + b (replaces a concat followed by one matmul)."""
    x1 = x1_ref[...].astype(jnp.bfloat16)
    x2 = x2_ref[...].astype(jnp.bfloat16)
    o_ref[...] = (jnp.dot(x1, w1_ref[...], preferred_element_type=jnp.float32)
                  + jnp.dot(x2, w2_ref[...], preferred_element_type=jnp.float32)
                  + b_ref[...])


def proj_logsoftmax_kernel(x_ref, w_ref, b_ref, o_ref):
    """Fused vocabulary projection + log_softmax epilogue (lane-padded V).

    Padded logit columns have bias = -1e30, so they never win the max and
    contribute 0 to the sum; the padded output columns are sliced off outside.
    """
    x = x_ref[...].astype(jnp.bfloat16)
    logits = (jnp.dot(x, w_ref[...], preferred_element_type=jnp.float32)
              + b_ref[...])
    m = jnp.max(logits, axis=-1, keepdims=True)
    s = logits - m
    lse = jnp.log(jnp.sum(jnp.exp(s), axis=-1, keepdims=True))
    o_ref[...] = s - lse


def lstm_chunk_kernel(gx_ref, whh_ref, out_ref, h_sc, c_sc):
    """Processes a (T_CHUNK, B_BLOCK) chunk of the recurrence per grid step.

    grid = (batch_blocks, time_chunks); gx = x @ W_ih^T + b is precomputed
    (gates pre-permuted to [i|f|o|g]).  h/c persist in VMEM scratch across the
    time-chunk axis and are re-initialized when the time index is 0.
    """
    @pl.when(pl.program_id(1) == 0)
    def _():
        h_sc[...] = jnp.zeros_like(h_sc)
        c_sc[...] = jnp.zeros_like(c_sc)

    H = h_sc.shape[-1]
    T = gx_ref.shape[0]

    def step(t, carry):
        h, c = carry
        gates = gx_ref[t] + jnp.dot(h.astype(jnp.bfloat16), whh_ref[...],
                                    preferred_element_type=jnp.float32)
        sig = jax.nn.sigmoid(gates[:, :3 * H])      # one sigmoid over [i|f|o]
        i = sig[:, 0 * H:1 * H]
        f = sig[:, 1 * H:2 * H]
        o = sig[:, 2 * H:3 * H]
        g = jnp.tanh(gates[:, 3 * H:])
        c_new = f * c + i * g
        h_new = o * jnp.tanh(c_new)
        out_ref[t] = h_new
        return (h_new, c_new)

    h, c = jax.lax.fori_loop(0, T, step, (h_sc[...], c_sc[...]), unroll=True)
    h_sc[...] = h
    c_sc[...] = c


# ----------------------------------------------------------------------------
# Pallas-call wrappers
# ----------------------------------------------------------------------------
def _matmul_bias(x2d, w_t, b_row):
    M, K = x2d.shape
    N = w_t.shape[1]
    TM, M_pad = _row_tiling(M)
    x_p = _pad_rows(x2d, M_pad)
    out = pl.pallas_call(
        linear_kernel,
        out_shape=jax.ShapeDtypeStruct((M_pad, N), jnp.float32),
        grid_spec=pltpu.PrefetchScalarGridSpec(
            num_scalar_prefetch=0,
            grid=(M_pad // TM,),
            in_specs=[
                pl.BlockSpec((TM, K), lambda i: (i, 0)),
                pl.BlockSpec((K, N), lambda i: (0, 0)),
                pl.BlockSpec((1, N), lambda i: (0, 0)),
            ],
            out_specs=pl.BlockSpec((TM, N), lambda i: (i, 0)),
        ),
        compiler_params=pltpu.CompilerParams(dimension_semantics=("parallel",)),
    )(x_p, w_t, b_row)
    return out[:M]


def _dual_matmul_bias(x1, x2, w1_t, w2_t, b_row):
    M, K1 = x1.shape
    K2 = x2.shape[1]
    N = w1_t.shape[1]
    TM, M_pad = _row_tiling(M)
    x1_p = _pad_rows(x1, M_pad)
    x2_p = _pad_rows(x2, M_pad)
    out = pl.pallas_call(
        dual_linear_kernel,
        out_shape=jax.ShapeDtypeStruct((M_pad, N), jnp.float32),
        grid_spec=pltpu.PrefetchScalarGridSpec(
            num_scalar_prefetch=0,
            grid=(M_pad // TM,),
            in_specs=[
                pl.BlockSpec((TM, K1), lambda i: (i, 0)),
                pl.BlockSpec((TM, K2), lambda i: (i, 0)),
                pl.BlockSpec((K1, N), lambda i: (0, 0)),
                pl.BlockSpec((K2, N), lambda i: (0, 0)),
                pl.BlockSpec((1, N), lambda i: (0, 0)),
            ],
            out_specs=pl.BlockSpec((TM, N), lambda i: (i, 0)),
        ),
        compiler_params=pltpu.CompilerParams(dimension_semantics=("parallel",)),
    )(x1_p, x2_p, w1_t, w2_t, b_row)
    return out[:M]


def linear_apply_seq(lin, x_seq, n_out):
    """x_seq: (S, B_pad, K) -> (S, B_pad, n_out); weight N is lane-padded."""
    S, Bp, K = x_seq.shape
    out = _matmul_bias(x_seq.reshape(S * Bp, K), lin["w_t"], lin["b"])
    return out[:, :n_out].reshape(S, Bp, n_out)


def dual_linear_apply_seq(lin, x1, x2, n_out):
    S, Bp, K1 = x1.shape
    K2 = x2.shape[-1]
    out = _dual_matmul_bias(x1.reshape(S * Bp, K1), x2.reshape(S * Bp, K2),
                            lin["w1_t"], lin["w2_t"], lin["b"])
    return out[:, :n_out].reshape(S, Bp, n_out)


def _lstm_recurrence(gx, whh_t, T):
    """gx: (S_pad, B_pad, 4H) f32 gate pre-activations; whh_t: (H, 4H) bf16."""
    S_pad, Bp, G = gx.shape
    H = whh_t.shape[0]
    # Two batch blocks (still sublane-aligned) so v7x's two TensorCores split
    # the recurrence; one block otherwise.  Extra grid steps are ~free.
    BB = Bp // 2 if (Bp % 16 == 0) else Bp
    grid = (Bp // BB, S_pad // T)
    return pl.pallas_call(
        lstm_chunk_kernel,
        out_shape=jax.ShapeDtypeStruct((S_pad, Bp, H), jnp.float32),
        grid_spec=pltpu.PrefetchScalarGridSpec(
            num_scalar_prefetch=0,
            grid=grid,
            in_specs=[
                pl.BlockSpec((T, BB, G), lambda b, s: (s, b, 0)),
                pl.BlockSpec((H, G), lambda b, s: (0, 0)),
            ],
            out_specs=pl.BlockSpec((T, BB, H), lambda b, s: (s, b, 0)),
            scratch_shapes=[pltpu.VMEM((BB, H), jnp.float32),
                            pltpu.VMEM((BB, H), jnp.float32)],
        ),
        compiler_params=pltpu.CompilerParams(
            dimension_semantics=("parallel", "arbitrary")),
    )(gx, whh_t)


def lstm_apply(enc, x1, x2=None):
    """Run one LSTM.  x1: (S, B_pad, K1); optional x2: (S, B_pad, K2) (the
    second half of what PyTorch would torch.cat before the LSTM; for
    encoder1/encoder2 the `change` linear is already folded into w2_t)."""
    S, Bp, K1 = x1.shape
    H, G = enc["whh_t"].shape
    T, S_pad = _chunk_time(S)
    if S_pad != S:
        pad = ((0, S_pad - S), (0, 0), (0, 0))
        x1 = jnp.pad(x1, pad)
        if x2 is not None:
            x2 = jnp.pad(x2, pad)
    M = S_pad * Bp
    if x2 is None:
        gx = _matmul_bias(x1.reshape(M, K1), enc["w1_t"], enc["b"])
    else:
        gx = _dual_matmul_bias(x1.reshape(M, K1), x2.reshape(M, x2.shape[-1]),
                               enc["w1_t"], enc["w2_t"], enc["b"])
    gx = gx.reshape(S_pad, Bp, G)
    out = _lstm_recurrence(gx, enc["whh_t"], T)
    return out[:S]                                    # (S, B_pad, H)


def proj_logsoftmax_bm(x_seq, head, batch, n_out):
    """Fused `log_softmax(x @ W^T + b)` emitted batch-major (batch, S, n_out).

    Only the small input is transposed; the big log-prob tensor is written
    once, lane-dense (V padded to a 128 multiple), then the true columns are
    sliced.
    """
    S, Bp, K = x_seq.shape
    V_pad = head["w_t"].shape[1]
    x2 = jnp.transpose(x_seq[:, :batch], (1, 0, 2)).reshape(batch * S, K)
    M = batch * S
    TM, M_pad = _proj_row_tiling(M, K, V_pad)
    x_p = _pad_rows(x2, M_pad)
    out = pl.pallas_call(
        proj_logsoftmax_kernel,
        out_shape=jax.ShapeDtypeStruct((M_pad, V_pad), jnp.float32),
        grid_spec=pltpu.PrefetchScalarGridSpec(
            num_scalar_prefetch=0,
            grid=(M_pad // TM,),
            in_specs=[
                pl.BlockSpec((TM, K), lambda i: (i, 0)),
                pl.BlockSpec((K, V_pad), lambda i: (0, 0)),
                pl.BlockSpec((1, V_pad), lambda i: (0, 0)),
            ],
            out_specs=pl.BlockSpec((TM, V_pad), lambda i: (i, 0)),
        ),
        compiler_params=pltpu.CompilerParams(
            dimension_semantics=("parallel",),
            vmem_limit_bytes=32 * 1024 * 1024),
    )(x_p, head["w_t"], head["b"])
    # TODO(synk): for very large vocabularies, tile V with an online (two-pass)
    # log-softmax instead of keeping the full V axis resident in VMEM.
    return out[:M, :n_out].reshape(batch, S, n_out)


# ----------------------------------------------------------------------------
# Tiny elementwise / reduction pieces left to XLA fusion
# ----------------------------------------------------------------------------
def vae_split(h, noise):
    """h: (S, B, 2L).  mu = second half, log_sigma = softplus(first half)."""
    L = h.shape[-1] // 2
    mu = h[..., L:]
    log_sigma = jax.nn.softplus(h[..., :L])
    if noise is None:
        z = mu
    else:
        z = mu + jnp.exp(0.5 * log_sigma) * noise
    return z, mu, log_sigma


def kld_mean(mu, log_sigma):
    return jnp.mean(jnp.sum(
        0.5 * (-log_sigma + jnp.exp(log_sigma) + mu * mu - 1.0), axis=-1))


# ----------------------------------------------------------------------------
# Parameter init (deterministic, shapes from CASTat.__init__)
# ----------------------------------------------------------------------------
def init_params(key, dims, num_users, num_items, num_cats, num_tims):
    keys = iter(jax.random.split(key, 128))

    def nxt():
        return next(keys)

    def emb(n):
        return (1.0 / dims) * jax.random.normal(nxt(), (n, dims), jnp.float32)

    def lstm(in_size):
        k = 1.0 / np.sqrt(dims)
        return dict(
            w_ih=jax.random.uniform(nxt(), (4 * dims, in_size), jnp.float32, -k, k),
            w_hh=jax.random.uniform(nxt(), (4 * dims, dims), jnp.float32, -k, k),
            b_ih=jax.random.uniform(nxt(), (4 * dims,), jnp.float32, -k, k),
            b_hh=jax.random.uniform(nxt(), (4 * dims,), jnp.float32, -k, k),
        )

    def lin(out_f, in_f):
        scale = np.sqrt(2.0 / (in_f + out_f))  # xavier-normal-ish
        return dict(
            w=scale * jax.random.normal(nxt(), (out_f, in_f), jnp.float32),
            b=0.01 * jax.random.normal(nxt(), (out_f,), jnp.float32),
        )

    half = dims // 2
    return dict(
        user_emb=emb(num_users),
        item_emb=emb(num_items),
        tim_emb=emb(num_tims),
        cat_emb=emb(num_cats),
        encoder=lstm(dims),
        encoder1=lstm(dims * 2),
        encoder2=lstm(dims * 2),
        encoder3=lstm(dims * 2),
        encoder4=lstm(dims * 2),
        linear_50_50=lin(dims, dims),
        linear_50_50_1=lin(dims, dims),
        linear_50_50_2=lin(dims * 2, dims * 2),
        out_item=lin(num_items, half),
        out_item1=lin(num_items, half),
        out_item2=lin(num_items, dims),
        out_cate=lin(num_cats, dims),
        out_cate1=lin(num_cats, dims),
        change=lin(dims, half),
        change1=lin(dims, half),
    )


# ----------------------------------------------------------------------------
# One-time weight preprocessing (hoisted out of the jitted forward)
# ----------------------------------------------------------------------------
def _perm_ifog(m, H):
    """PyTorch gate order [i; f; g; o] (rows) -> [i; f; o; g]."""
    return jnp.concatenate(
        [m[0:H], m[H:2 * H], m[3 * H:4 * H], m[2 * H:3 * H]], axis=0)


def _prep_lstm(p, k1=None, change=None):
    """Gate-permute, transpose and bf16-cast one LSTM's weights.

    If `k1` is given, the input is split as (x1[:, :k1], x2[:, k1:]).  If
    `change` is also given, x2 arrives *before* the nn.Linear `change`, which
    is folded in: w2 <- W_right @ W_change, b += W_right @ b_change.
    """
    H = p["w_hh"].shape[1]
    w_ih = p["w_ih"]
    b = p["b_ih"] + p["b_hh"]
    if k1 is None:
        w1, w2 = w_ih, None
    else:
        w1 = w_ih[:, :k1]
        w_right = w_ih[:, k1:]
        if change is None:
            w2 = w_right
        else:
            w2 = w_right @ change["w"]          # (4H, k2) composed in f32
            b = b + w_right @ change["b"]
    out = dict(
        w1_t=_perm_ifog(w1, H).T.astype(jnp.bfloat16),
        whh_t=_perm_ifog(p["w_hh"], H).T.astype(jnp.bfloat16),
        b=_perm_ifog(b, H).reshape(1, -1).astype(jnp.float32),
    )
    if w2 is not None:
        out["w2_t"] = _perm_ifog(w2, H).T.astype(jnp.bfloat16)
    return out


def _prep_linear(p):
    w_t = jnp.asarray(p["w"]).T
    b = jnp.asarray(p["b"]).reshape(1, -1).astype(jnp.float32)
    N = w_t.shape[1]
    N_pad = _round_up(N, 128)
    if N_pad != N:                               # lane-dense output
        w_t = jnp.pad(w_t, ((0, 0), (0, N_pad - N)))
        b = jnp.pad(b, ((0, 0), (0, N_pad - N)))
    return dict(w_t=w_t.astype(jnp.bfloat16), b=b)


def _prep_linear_dual(p, k1):
    base = _prep_linear(p)
    return dict(w1_t=base["w_t"][:k1], w2_t=base["w_t"][k1:], b=base["b"])


def _prep_head(p):
    w_t = jnp.asarray(p["w"]).T
    b = jnp.asarray(p["b"]).reshape(1, -1).astype(jnp.float32)
    V = w_t.shape[1]
    V_pad = _round_up(V, 128)
    if V_pad != V:
        w_t = jnp.pad(w_t, ((0, 0), (0, V_pad - V)))
        # Padded logit columns must never win the max / contribute to the sum.
        b = jnp.pad(b, ((0, 0), (0, V_pad - V)), constant_values=-1e30)
    return dict(w_t=w_t.astype(jnp.bfloat16), b=b)


def preprocess_params(params):
    D = params["item_emb"].shape[1]
    return dict(
        user_emb=params["user_emb"],
        item_emb=params["item_emb"],
        tim_emb=params["tim_emb"],
        cat_emb=params["cat_emb"],
        encoder=_prep_lstm(params["encoder"]),
        encoder1=_prep_lstm(params["encoder1"], k1=D, change=params["change"]),
        encoder2=_prep_lstm(params["encoder2"], k1=D, change=params["change1"]),
        encoder3=_prep_lstm(params["encoder3"], k1=D),
        encoder4=_prep_lstm(params["encoder4"], k1=D),
        linear_50_50=_prep_linear(params["linear_50_50"]),
        linear_50_50_1=_prep_linear(params["linear_50_50_1"]),
        linear_50_50_2=_prep_linear_dual(params["linear_50_50_2"], k1=D),
        out_item=_prep_head(params["out_item"]),
        out_item1=_prep_head(params["out_item1"]),
        out_item2=_prep_head(params["out_item2"]),
        out_cate1=_prep_head(params["out_cate1"]),
    )


# ----------------------------------------------------------------------------
# Forward pass (mirrors CASTat.forward)
# ----------------------------------------------------------------------------
@functools.partial(jax.jit, static_argnames=("for_pred",))
def castat_forward(fp, seq_var, user_var, item_var, tim_seq_var, cat_seq_var,
                   noise_key, for_pred=False):
    B, S = seq_var.shape
    D = fp["item_emb"].shape[1]
    half = D // 2
    n_items = fp["item_emb"].shape[0]
    n_cats = fp["cat_emb"].shape[0]
    B_pad = _round_up(B, 8)

    # Embedding lookups (glue).  Dropout ratio = 0 -> identity.
    item_embs = fp["item_emb"][seq_var]               # (B, S, D)
    cat_embs = fp["cat_emb"][cat_seq_var[..., 0]]     # (B, S, D) (squeeze(2))
    tim_embs = fp["tim_emb"][tim_seq_var[..., 0]]     # (B, S, D)
    user_e = fp["user_emb"][user_var[:, 0]]           # (B, D)

    def to_sb(x):                                     # (B,S,D) -> (S,B_pad,D)
        x = jnp.transpose(x, (1, 0, 2))
        if B_pad != B:
            x = jnp.pad(x, ((0, 0), (0, B_pad - B), (0, 0)))
        return x

    item_sb = to_sb(item_embs)
    cat_sb = to_sb(cat_embs)
    tim_sb = to_sb(tim_embs)
    if B_pad != B:
        user_e = jnp.pad(user_e, ((0, B_pad - B), (0, 0)))
    user_sb = jnp.broadcast_to(user_e[None], (S, B_pad, D))

    k1, k2, k3 = jax.random.split(noise_key, 3)

    # --- stage 1 ---------------------------------------------------------
    out1 = lstm_apply(fp["encoder"], item_sb)                       # (S,Bp,D)
    out1 = linear_apply_seq(fp["linear_50_50"], out1, D)
    noise1 = None if for_pred else jax.random.normal(k1, (S, B_pad, half),
                                                     jnp.float32)
    z1, mu1, ls1 = vae_split(out1, noise1)
    # encoder1 input = cat(cat_embs, change(z1)); `change` folded into w2_t.
    output_hc_2 = lstm_apply(fp["encoder1"], cat_sb, z1)
    item_predict = proj_logsoftmax_bm(z1, fp["out_item"], B, n_items)
    cate_predict1 = proj_logsoftmax_bm(output_hc_2, fp["out_cate1"], B, n_cats)

    # --- stage 2 ---------------------------------------------------------
    out3 = lstm_apply(fp["encoder3"], item_sb, output_hc_2)
    out3 = linear_apply_seq(fp["linear_50_50_1"], out3, D)
    noise2 = None if for_pred else jax.random.normal(k2, (S, B_pad, half),
                                                     jnp.float32)
    z2, mu2, ls2 = vae_split(out3, noise2)
    item_predict1 = proj_logsoftmax_bm(z2, fp["out_item1"], B, n_items)
    output_ht_2 = lstm_apply(fp["encoder2"], tim_sb, z2)

    # --- stage 3 ---------------------------------------------------------
    out4 = lstm_apply(fp["encoder4"], item_sb, output_ht_2)
    out_last = dual_linear_apply_seq(fp["linear_50_50_2"], out4, user_sb, 2 * D)
    noise3 = None if for_pred else jax.random.normal(k3, (S, B_pad, D),
                                                     jnp.float32)
    z3, mu3, ls3 = vae_split(out_last, noise3)
    item_predict2 = proj_logsoftmax_bm(z3, fp["out_item2"], B, n_items)

    # KLDs over the real batch rows only (padded rows are garbage).
    kld = kld_mean(mu1[:, :B], ls1[:, :B])
    kld2 = kld_mean(mu2[:, :B], ls2[:, :B])
    kld3 = kld_mean(mu3[:, :B], ls3[:, :B])

    if for_pred:
        item_predict_last = item_predict2[:, -1, :]          # (B, num_items)
        res = jnp.take_along_axis(item_predict_last, item_var[..., 0], axis=1)
    else:
        res = item_predict

    return (res, kld, jnp.float32(0.0), item_predict1, kld2,
            item_predict2, kld3, cate_predict1)


# ----------------------------------------------------------------------------
# Pure-JAX LSTM reference (sanity check for the Pallas LSTM kernel)
# ----------------------------------------------------------------------------
def lstm_ref(x, w_ih, w_hh, b_ih, b_hh):
    S, B, _ = x.shape
    H = w_hh.shape[1]

    def step(carry, xt):
        h, c = carry
        gates = xt @ w_ih.T + h @ w_hh.T + b_ih + b_hh
        i = jax.nn.sigmoid(gates[:, 0 * H:1 * H])
        f = jax.nn.sigmoid(gates[:, 1 * H:2 * H])
        g = jnp.tanh(gates[:, 2 * H:3 * H])
        o = jax.nn.sigmoid(gates[:, 3 * H:4 * H])
        c = f * c + i * g
        h = o * jnp.tanh(c)
        return (h, c), h

    init = (jnp.zeros((B, H), jnp.float32), jnp.zeros((B, H), jnp.float32))
    _, ys = jax.lax.scan(step, init, x)
    return ys


# ----------------------------------------------------------------------------
if __name__ == "__main__":
    DIMS = 32
    NUM_USERS, NUM_ITEMS, NUM_CATS, NUM_TIMS = 6, 40, 10, 12
    B, S = 2, 8

    root = jax.random.PRNGKey(0)
    kp, ks, ku, ki, kt, kc, kn = jax.random.split(root, 7)

    params = init_params(kp, DIMS, NUM_USERS, NUM_ITEMS, NUM_CATS, NUM_TIMS)
    fast = preprocess_params(params)

    seq_var = jax.random.randint(ks, (B, S), 0, NUM_ITEMS, jnp.int32)
    user_var = jax.random.randint(ku, (B, 1), 0, NUM_USERS, jnp.int32)
    item_var = jax.random.randint(ki, (B, 3, 1), 0, NUM_ITEMS, jnp.int32)
    tim_seq_var = jax.random.randint(kt, (B, S, 1), 0, NUM_TIMS, jnp.int32)
    cat_seq_var = jax.random.randint(kc, (B, S, 1), 0, NUM_CATS, jnp.int32)

    # Sanity check 1: chunked bf16 Pallas LSTM vs pure-f32 scan reference.
    B_pad = _round_up(B, 8)
    x_test = jax.random.normal(jax.random.PRNGKey(7), (S, B, DIMS), jnp.float32)
    x_pad = jnp.pad(x_test, ((0, 0), (0, B_pad - B), (0, 0)))
    got = lstm_apply(fast["encoder"], x_pad)[:, :B]
    ref = lstm_ref(x_test, **params["encoder"])
    np.testing.assert_allclose(np.asarray(got), np.asarray(ref),
                               rtol=0, atol=5e-2)

    # Sanity check 2: fused bf16 projection + log_softmax (lane-padded V).
    x_proj = jax.random.normal(jax.random.PRNGKey(11), (S, B, DIMS // 2),
                               jnp.float32)
    got_p = proj_logsoftmax_bm(x_proj, fast["out_item"], B, NUM_ITEMS)
    ref_p = jax.nn.log_softmax(
        jnp.einsum("sbk,vk->bsv", x_proj, params["out_item"]["w"])
        + params["out_item"]["b"], axis=-1)
    np.testing.assert_allclose(np.asarray(got_p), np.asarray(ref_p),
                               rtol=0, atol=5e-2)

    outs = castat_forward(fast, seq_var, user_var, item_var, tim_seq_var,
                          cat_seq_var, kn, for_pred=False)
    outs = jax.block_until_ready(outs)

    res, kld, zero, ip1, kld2, ip2, kld3, cp1 = outs
    assert res.shape == (B, S, NUM_ITEMS)
    assert ip1.shape == (B, S, NUM_ITEMS)
    assert ip2.shape == (B, S, NUM_ITEMS)
    assert cp1.shape == (B, S, NUM_CATS)
    assert kld.shape == () and kld2.shape == () and kld3.shape == ()
    assert np.all(np.isfinite(np.asarray(res)))

    # for_pred path (gather over candidate items from the last step).
    outs_pred = castat_forward(fast, seq_var, user_var, item_var,
                               tim_seq_var, cat_seq_var, kn, for_pred=True)
    outs_pred = jax.block_until_ready(outs_pred)
    assert outs_pred[0].shape == (B, 3)

    print("KERNEL_OK")
</pallas_src>

<mosaic_0001>
module attributes {stable_mosaic.version = 11 : i64} {
  func.func @linear_kernel(%arg0: i32, %arg1: memref<64x32xf32, #tpu.memory_space<vmem>>, %arg2: memref<32x128xbf16, #tpu.memory_space<vmem>>, %arg3: memref<1x128xf32, #tpu.memory_space<vmem>>, %arg4: memref<64x128xf32, #tpu.memory_space<vmem>>) attributes {dimension_semantics = [#tpu.dimension_semantics<parallel>], iteration_bounds = array<i64: 1>, scalar_prefetch = 0 : i64, scratch_operands = 0 : i64, tpu.core_type = #tpu.core_type<tc>, window_params = [{transform_indices = @transform_0, window_bounds = array<i64: 64, 32>}, {pipeline_mode = #tpu.pipeline_mode<synchronous>, transform_indices = @transform_1, window_bounds = array<i64: 32, 128>}, {pipeline_mode = #tpu.pipeline_mode<synchronous>, transform_indices = @transform_2, window_bounds = array<i64: 1, 128>}, {transform_indices = @transform_3, window_bounds = array<i64: 64, 128>}]} {
    %c0 = arith.constant 0 : index
    %c0_0 = arith.constant 0 : index
    %0 = vector.load %arg1[%c0, %c0_0] : memref<64x32xf32, #tpu.memory_space<vmem>>, vector<64x32xf32>
    %1 = arith.truncf %0 : vector<64x32xf32> to vector<64x32xbf16>
    %c0_1 = arith.constant 0 : index
    %c0_2 = arith.constant 0 : index
    %2 = vector.load %arg2[%c0_1, %c0_2] : memref<32x128xbf16, #tpu.memory_space<vmem>>, vector<32x128xbf16>
    %cst = arith.constant dense<0.000000e+00> : vector<64x128xf32>
    %3 = tpu.matmul %1, %2, %cst {dimension_numbers = #tpu.dot_dimension_numbers<[1], [0], [0], [1], [0, 0, 1, 1], [], []>} : vector<64x32xbf16>, vector<32x128xbf16>, vector<64x128xf32> -> vector<64x128xf32>
    %c0_3 = arith.constant 0 : index
    %c0_4 = arith.constant 0 : index
    %4 = vector.load %arg3[%c0_3, %c0_4] : memref<1x128xf32, #tpu.memory_space<vmem>>, vector<1x128xf32>
    %5 = vector.broadcast %4 : vector<1x128xf32> to vector<64x128xf32>
    %6 = arith.addf %3, %5 : vector<64x128xf32>
    %c0_5 = arith.constant 0 : index
    %c0_6 = arith.constant 0 : index
    %7 = vector.load %arg4[%c0_5, %c0_6] : memref<64x128xf32, #tpu.memory_space<vmem>>, vector<64x128xf32>
    tpu.vector_store %arg4[%c0_5, %c0_6], %6 {strides = array<i32>} : memref<64x128xf32, #tpu.memory_space<vmem>>, vector<64x128xf32>,
    return
  }
  func.func @transform_0(%arg0: i32) -> (i32, i32) {
    %c0_i32 = arith.constant 0 : i32
    %c0_i32_0 = arith.constant 0 : i32
    return %arg0, %c0_i32 : i32, i32
  }
  func.func @transform_1(%arg0: i32) -> (i32, i32) {
    %c0_i32 = arith.constant 0 : i32
    %c0_i32_0 = arith.constant 0 : i32
    %c0_i32_1 = arith.constant 0 : i32
    return %c0_i32, %c0_i32_0 : i32, i32
  }
  func.func @transform_2(%arg0: i32) -> (i32, i32) {
    %c0_i32 = arith.constant 0 : i32
    %c0_i32_0 = arith.constant 0 : i32
    %c0_i32_1 = arith.constant 0 : i32
    return %c0_i32, %c0_i32_0 : i32, i32
  }
  func.func @transform_3(%arg0: i32) -> (i32, i32) {
    %c0_i32 = arith.constant 0 : i32
    %c0_i32_0 = arith.constant 0 : i32
    return %arg0, %c0_i32 : i32, i32
  }
}

</mosaic_0001>

<bundles_post_ra>
// kernel: tpu_custom_call.1
= control target key start
LH: loop header
LB: loop body
LE: loop exit
PB: predicated region body
PF: predicated region fallthrough
CT: control target
= control target key end

     0   :  { %vm51_vm0 = vcmask 261120   ;;  %s283_s0 = inlined_call_operand.vmem [shape: f32[64,32], index: 0, kind: input, shape index: {}]   ;;  %s284_s1 = inlined_call_operand.vmem [shape: bf16[32,128], index: 1, kind: input, shape index: {}]   ;;  %s285_s2 = inlined_call_operand.vmem [shape: f32[1,128], index: 2, kind: input, shape index: {}]   ;;  %s286_s3 = inlined_call_operand.hbm [shape: f32[64,128], index: 3, kind: output, shape index: {}]  }
   0x1   :  { %v185_v0 = vld [vmem:[%s284_s1] sm:$0xff]   ;;  %v186_v1 = vld [vmem:[%s284_s1 + $0x8] sm:$0xff]   ;;  %v18_v7 = vld [vmem:[%s283_s0 + $0x10] sm:$0xff] }
   0x2   :  { %166 = vmatprep.subr.bf16.mxu0 %v185_v0  ;;  %178 = vmatprep.subr.bf16.mxu1 %v185_v0  ;;  %v16_v2 = vld [vmem:[%s283_s0] sm:$0xff]  ;;  %v17_v3 = vld [vmem:[%s283_s0 + $0x8] sm:$0xff]  ;;  %v19_v8 = vld [vmem:[%s283_s0 + $0x18] sm:$0xff] }
   0x3   :  { %v20_v4 = vld [vmem:[%s283_s0 + $0x20] sm:$0xff]  ;;  %167 = vmatpush3.bf16.msra.mxu0 %v185_v0  ;;  %180 = vmatpush3.bf16.msra.mxu1 %v185_v0  ;;  %v24_v5 = vpack.c.bf16 %v17_v3, %v16_v2  ;;  %v21_v6 = vld [vmem:[%s283_s0 + $0x28] sm:$0xff]  ;;  %v22_v10 = vld [vmem:[%s283_s0 + $0x30] sm:$0xff] }
   0x4   :  { %168 = vmatprep.subr.bf16.mxu0 %v186_v1  ;;  %179 = vmatprep.subr.bf16.mxu1 %v186_v1  ;;  %v26_v9 = vpack.c.bf16 %v21_v6, %v20_v4  ;;  %v23_v11 = vld [vmem:[%s283_s0 + $0x38] sm:$0xff] }
   0x5   :  { %8 = vsyncpa [#allocation3], 0  ;;  %170 = vmatprep.mubr.msk.bf16.mxu0 %vm51_vm0, %v24_v5  ;;  %v25_v12 = vpack.c.bf16 %v19_v8, %v18_v7  ;;  %v27_v13 = vpack.c.bf16 %v23_v11, %v22_v10  ;;  %v153_v14 = vld [vmem:[%s285_s2] ss:$0 sm:$0xff]  ;;  %s211_s0 = smov [#allocation2]  }
   0x6   :  { %174 = vmatprep.mubr.msk.bf16.mxu1 %vm51_vm0, %v26_v9  ;;  %s142_s6 = sshll.u32 %s211_s0, 4  ;;  %s143_s6 = int_to_ptr.vmem [resolvable:$true] %s142_s6 }
   0x7   :  { %169 = vmatpush3.bf16.msra.mxu0 %v186_v1  ;;  %181 = vmatpush3.bf16.msra.mxu1 %v186_v1  ;;  %s187_s2 = scalar_lea.vmem %s143_s6, 1024  ;;  %p192_p1 = scmp.lt.s32.totalorder %s143_s6, %s143_s6 }
   0x8   :  { %p188_p0 = scmp.ne.s32.totalorder %s143_s6, %s187_s2  ;;  %p193_p2 = scmp.lt.s32.totalorder %s187_s2, %s187_s2 }
   0xa   :  { %171 = vmatmul.mubr.msk.bf16.vlgmr.msra.gmra.mrb[0].mxu0 %vm51_vm0, %v25_v12  ;;  %175 = vmatmul.mubr.msk.bf16.vlgmr.msra.gmra.mrb[0].mxu1 %vm51_vm0, %v27_v13  ;;  %p194_p3 = por %p193_p2, %p192_p1 }
   0xc   :  { %p195_p4 = pnand %p194_p3, %p188_p0 }
  0xdd   :  { %v172_v15 = vpop.f32.mrb[0].mxu0  ;;  %v176_v16 = vpop.f32.mrb[0].mxu1 }
  0xde   :  { %v107_v17 = vadd.f32 %v172_v15, %v153_v14  ;;  %v123_v18 = vadd.f32 %v176_v16, %v153_v14  ;;  %v98_v19 = vpop.f32.mrb[1].mxu0  ;;  %v114_v20 = vpop.f32.mrb[1].mxu1 }
  0xdf   :  { %v99_v21 = vadd.f32 %v153_v14, %v98_v19  ;;  %v115_v22 = vadd.f32 %v153_v14, %v114_v20  ;;  %v173_v23 = vpop.f32.mrb[2].mxu0  ;;  %v177_v24 = vpop.f32.mrb[2].mxu1 }
  0xe0   :  { %131 = vst [vmem:[#allocation2 + $0x10] sm:$0xff] %v107_v17  ;;  %135 = vst [vmem:[#allocation2 + $0x30] sm:$0xff] %v123_v18  ;;  %v110_v25 = vadd.f32 %v173_v23, %v153_v14  ;;  %v126_v26 = vadd.f32 %v177_v24, %v153_v14  ;;  %v101_v27 = vpop.f32.mrb[3].mxu0  ;;  %v117_v28 = vpop.f32.mrb[3].mxu1 }
  0xe1   :  { %129 = vst [vmem:[#allocation2] sm:$0xff] %v99_v21  ;;  %133 = vst [vmem:[#allocation2 + $0x20] sm:$0xff] %v115_v22  ;;  %v102_v29 = vadd.f32 %v153_v14, %v101_v27  ;;  %v118_v30 = vadd.f32 %v153_v14, %v117_v28 }
  0xe2   :  { %132 = vst [vmem:[#allocation2 + $0x18] sm:$0xff] %v110_v25  ;;  %136 = vst [vmem:[#allocation2 + $0x38] sm:$0xff] %v126_v26 }
  0xe3   :  { %130 = vst [vmem:[#allocation2 + $0x8] sm:$0xff] %v102_v29  ;;  %134 = vst [vmem:[#allocation2 + $0x28] sm:$0xff] %v118_v30 }
  0xe4   :  { %198 = shalt.err (!%p195_p4)
}
  0xe5   :  { %s199_s9 = scalar_lea.hbm %s286_s3, 1024 }
  0xe6   :  { %p200_p5 = scmp.ne.s32.totalorder %s286_s3, %s199_s9  ;;  %p203_p6 = scmp.lt.u32.totalorder %s199_s9, %s286_s3 }
  0xe8   :  { %p205_p7 = pnand %p203_p6, %p200_p5 }
  0xea   :  { %208 = shalt.err (!%p205_p7)
}
  0xeb   :  { %s212_s14 = smov 128   ;;  %s213_s15 = smov 8  }
  0xec   :  { %148 = dma.vmem_to_hbm [thread:$0]  %s143_s6, 1024, %s286_s3, [#allocation3], %s212_s14, %s212_s14, %s213_s15  }
  0xed   :  { %209 = dma.done.wait [#allocation3], 1024  }
  0xee   :  { %210 = vsyncadd [#allocation3], 4294966272 }
  0xef   :  { %152 = vsyncpa [#allocation3], 1 }

</bundles_post_ra>
